<compile_context>
chip_gen: v6e
topology: v6e:2x2x1
jax: 0.10.0
libtpu: 0.0.40
codegen_flags: <defaults>
</compile_context>

<pallas_src>
import functools

import jax
import jax.numpy as jnp
from jax.experimental import pallas as pl
from jax.experimental.pallas import tpu as pltpu


def _round_up(n, m):
    return ((n + m - 1) // m) * m


def _cdiv(a, b):
    return -(-a // b)


def _ff_kernel(seed_ref, x_ref, w_ref, b_ref, o_ref, *,
               rate, training, n_axis, h_axis, tn, th, col_stride):
    # x_ref: (tn, D)  w_ref: (D, th)  b_ref: (1, th)  o_ref: (tn, th)
    y = jnp.dot(x_ref[...], w_ref[...], preferred_element_type=jnp.float32)
    y = y + b_ref[...].astype(jnp.float32)
    y = jnp.maximum(y, 0.0)  # ReLU

    if training and rate > 0.0:
        if rate >= 1.0:
            # nn.Dropout(p=1.0) zeroes everything in training mode.
            y = jnp.zeros_like(y)
        else:
            # Inverted dropout.  Mask = hash(global element index, seed): deterministic,
            # tiling-invariant, no TPU-only PRNG primitives (interpret-mode safe).
            rows = (jax.lax.broadcasted_iota(jnp.int32, y.shape, 0)
                    + pl.program_id(n_axis) * tn).astype(jnp.uint32)
            cols = (jax.lax.broadcasted_iota(jnp.int32, y.shape, 1)
                    + pl.program_id(h_axis) * th).astype(jnp.uint32)
            idx = rows * jnp.uint32(col_stride) + cols
            h = idx ^ seed_ref[0].astype(jnp.uint32)
            # lowbias32 integer mix (murmur-style finalizer).
            h = (h ^ (h >> jnp.uint32(16))) * jnp.uint32(0x7FEB352D)
            h = (h ^ (h >> jnp.uint32(15))) * jnp.uint32(0x846CA68B)
            h = h ^ (h >> jnp.uint32(16))
            # keep iff uniform >= rate, compared in the exact-int float range [0, 2^24).
            u = (h >> jnp.uint32(8)).astype(jnp.float32)
            thresh = jnp.float32(rate * float(1 << 24))
            scale = jnp.float32(1.0 / (1.0 - rate))
            y = y * jnp.where(u >= thresh, scale, jnp.float32(0.0))
    # eval mode: dropout is identity (PyTorch .eval() semantics)

    o_ref[...] = y.astype(o_ref.dtype)


def ff_forward(x, w, b, *, rate=0.1, training=False, seed=0,
               tile_n=512, tile_h=512, compute_dtype=None):
    """x: (N, D), w: (D, H) (== torch weight.T), b: (H,) -> (N, H) in x.dtype."""
    N, D = x.shape
    Dw, H = w.shape
    assert D == Dw
    assert b.shape == (H,)

    out_dtype = x.dtype
    if compute_dtype is not None:
        x = x.astype(compute_dtype)
        w = w.astype(compute_dtype)

    itemsize = x.dtype.itemsize
    sub = {4: 8, 2: 16, 1: 32}.get(itemsize, 8)  # sublane multiple per compute dtype

    # ---- H (output-column) tiling: keep W resident when it is small. ----
    w_stream_bytes = D * H * w.dtype.itemsize
    if w_stream_bytes <= (8 << 20) or H <= 128:
        th = H                                   # single tile -> weight DMA'd once
    else:
        num_h = max(_cdiv(H, tile_h), 1)
        th = _round_up(_cdiv(H, num_h), 128)     # lane-dense column tiles
        if th >= H:
            th = H
    grid_h = _cdiv(H, th)

    # ---- N (row) tiling: balanced tiles, dtype-aware sublane rounding. ----
    num_n = max(_cdiv(N, tile_n), 1)
    tn = _round_up(_cdiv(N, num_n), sub)
    grid_n = _cdiv(N, tn)
    # Give both TensorCores work on v7x when the grid would otherwise be a single step.
    if grid_n * grid_h == 1 and N >= 2 * sub:
        tn = _round_up(_cdiv(N, 2), sub)
        grid_n = _cdiv(N, tn)

    # ---- Grid axis order: re-stream the smaller operand on the inner axis. ----
    x_stream_bytes = N * D * itemsize
    n_outer = w_stream_bytes <= x_stream_bytes
    if n_outer:
        grid = (grid_n, grid_h)
        x_map = lambda i, j, s: (i, 0)
        w_map = lambda i, j, s: (0, j)
        b_map = lambda i, j, s: (0, j)
        o_map = lambda i, j, s: (i, j)
        n_axis, h_axis = 0, 1
    else:
        grid = (grid_h, grid_n)
        x_map = lambda j, i, s: (i, 0)
        w_map = lambda j, i, s: (0, j)
        b_map = lambda j, i, s: (0, j)
        o_map = lambda j, i, s: (i, j)
        n_axis, h_axis = 1, 0

    # ---- VMEM budget: double-buffered tiles + f32 intermediate + scratch headroom. ----
    need = (2 * (tn * D * itemsize
                 + D * th * w.dtype.itemsize
                 + th * b.dtype.itemsize
                 + tn * th * jnp.dtype(out_dtype).itemsize)
            + tn * th * 4
            + (4 << 20))
    try:
        cap = int(pltpu.get_tpu_info().vmem_capacity_bytes) * 3 // 4
    except Exception:
        cap = 48 << 20  # safe on every generation (v7x has 64 MiB/core)
    vmem_limit = int(min(max(need, 16 << 20), cap))

    kernel = functools.partial(
        _ff_kernel, rate=float(rate), training=bool(training),
        n_axis=n_axis, h_axis=h_axis, tn=tn, th=th, col_stride=grid_h * th)

    seed_arr = jnp.asarray([seed], dtype=jnp.int32)
    b2 = b.reshape(1, H)

    grid_spec = pltpu.PrefetchScalarGridSpec(
        num_scalar_prefetch=1,
        grid=grid,
        in_specs=[
            pl.BlockSpec((tn, D), x_map),   # x row tile (full D)
            pl.BlockSpec((D, th), w_map),   # weight column tile (full D)
            pl.BlockSpec((1, th), b_map),   # bias tile
        ],
        out_specs=pl.BlockSpec((tn, th), o_map),
    )

    return pl.pallas_call(
        kernel,
        out_shape=jax.ShapeDtypeStruct((N, H), out_dtype),
        grid_spec=grid_spec,
        compiler_params=pltpu.CompilerParams(
            dimension_semantics=("parallel", "parallel"),
            vmem_limit_bytes=vmem_limit,
        ),
    )(seed_arr, x, w, b2)


if __name__ == "__main__":
    # Small shapes consistent with the module: batch=2, seq=8, input_dim=32, hidden=64.
    batch, seq, input_dim, hidden_dim = 2, 8, 32, 64
    dropout = 0.1

    key = jax.random.PRNGKey(0)
    kx, kw, kb = jax.random.split(key, 3)

    x = jax.random.normal(kx, (batch, seq, input_dim), dtype=jnp.float32)
    # PyTorch Linear params: weight (H, D), bias (H,).
    w_torch = jax.random.normal(kw, (hidden_dim, input_dim), dtype=jnp.float32) * 0.1
    b_torch = jax.random.normal(kb, (hidden_dim,), dtype=jnp.float32) * 0.1

    # Glue: flatten leading dims, transpose weight for x @ W layout.
    x2d = x.reshape(batch * seq, input_dim)
    w = w_torch.T  # (D, H)

    # Eval mode (dropout == identity): exact check against a pure-JAX reference.
    out2d = ff_forward(x2d, w, b_torch, rate=dropout, training=False)
    out = out2d.reshape(batch, seq, hidden_dim)
    jax.block_until_ready(out)
    ref_relu = jnp.maximum(x2d @ w + b_torch[None, :], 0.0)
    assert jnp.allclose(out, ref_relu.reshape(batch, seq, hidden_dim), atol=1e-5, rtol=1e-5)

    # Non-multiple N exercises the partial (masked) boundary-block path (no wrapper pads).
    x_odd = jax.random.normal(kx, (19, input_dim), dtype=jnp.float32)
    out_odd = ff_forward(x_odd, w, b_torch, rate=dropout, training=False)
    jax.block_until_ready(out_odd)
    ref_odd = jnp.maximum(x_odd @ w + b_torch[None, :], 0.0)
    assert out_odd.shape == (19, hidden_dim)
    assert jnp.allclose(out_odd, ref_odd, atol=1e-5, rtol=1e-5)

    # Training mode: inverted dropout — every element is either 0 or ref * 1/(1-rate).
    out_train = ff_forward(x2d, w, b_torch, rate=dropout, training=True, seed=123)
    jax.block_until_ready(out_train)
    assert out_train.shape == (batch * seq, hidden_dim)
    assert bool(jnp.all(jnp.isfinite(out_train)))
    scale = 1.0 / (1.0 - dropout)
    pattern_ok = (jnp.isclose(out_train, 0.0, atol=1e-6)
                  | jnp.isclose(out_train, ref_relu * scale, atol=1e-5, rtol=1e-5))
    assert bool(jnp.all(pattern_ok))

    print("KERNEL_OK")
</pallas_src>

<mosaic_0001>
module attributes {stable_mosaic.version = 11 : i64} {
  func.func @_ff_kernel(%arg0: i32, %arg1: i32, %arg2: memref<1xi32, #tpu.memory_space<smem>>, %arg3: memref<8x32xf32, #tpu.memory_space<vmem>>, %arg4: memref<32x64xf32, #tpu.memory_space<vmem>>, %arg5: memref<1x64xf32, #tpu.memory_space<vmem>>, %arg6: memref<8x64xf32, #tpu.memory_space<vmem>>) attributes {dimension_semantics = [#tpu.dimension_semantics<parallel>, #tpu.dimension_semantics<parallel>], iteration_bounds = array<i64: 1, 2>, scalar_prefetch = 1 : i64, scratch_operands = 0 : i64, tpu.core_type = #tpu.core_type<tc>, window_params = [{transform_indices = @transform_0, window_bounds = array<i64: 8, 32>}, {transform_indices = @transform_1, window_bounds = array<i64: 32, 64>}, {transform_indices = @transform_2, window_bounds = array<i64: 1, 64>}, {transform_indices = @transform_3, window_bounds = array<i64: 8, 64>}]} {
    %c0 = arith.constant 0 : index
    %c0_0 = arith.constant 0 : index
    %0 = vector.load %arg3[%c0, %c0_0] : memref<8x32xf32, #tpu.memory_space<vmem>>, vector<8x32xf32>
    %c0_1 = arith.constant 0 : index
    %c0_2 = arith.constant 0 : index
    %1 = vector.load %arg4[%c0_1, %c0_2] : memref<32x64xf32, #tpu.memory_space<vmem>>, vector<32x64xf32>
    %cst = arith.constant dense<0.000000e+00> : vector<8x64xf32>
    %2 = tpu.matmul %0, %1, %cst {dimension_numbers = #tpu.dot_dimension_numbers<[1], [0], [0], [1], [0, 0, 1, 1], [], []>} : vector<8x32xf32>, vector<32x64xf32>, vector<8x64xf32> -> vector<8x64xf32>
    %c0_3 = arith.constant 0 : index
    %c0_4 = arith.constant 0 : index
    %3 = vector.load %arg5[%c0_3, %c0_4] : memref<1x64xf32, #tpu.memory_space<vmem>>, vector<1x64xf32>
    %4 = vector.broadcast %3 : vector<1x64xf32> to vector<8x64xf32>
    %5 = arith.addf %2, %4 : vector<8x64xf32>
    %cst_5 = arith.constant 0.000000e+00 : f32
    %6 = vector.broadcast %cst_5 : f32 to vector<8x64xf32>
    %7 = arith.maximumf %5, %6 : vector<8x64xf32>
    %c0_6 = arith.constant 0 : index
    %c0_7 = arith.constant 0 : index
    %8 = vector.load %arg6[%c0_6, %c0_7] : memref<8x64xf32, #tpu.memory_space<vmem>>, vector<8x64xf32>
    tpu.vector_store %arg6[%c0_6, %c0_7], %7 {strides = array<i32>} : memref<8x64xf32, #tpu.memory_space<vmem>>, vector<8x64xf32>,
    return
  }
  func.func @transform_0(%arg0: i32, %arg1: i32, %arg2: memref<1xi32, #tpu.memory_space<smem>>) -> (i32, i32) {
    %c0_i32 = arith.constant 0 : i32
    %c0_i32_0 = arith.constant 0 : i32
    return %arg1, %c0_i32 : i32, i32
  }
  func.func @transform_1(%arg0: i32, %arg1: i32, %arg2: memref<1xi32, #tpu.memory_space<smem>>) -> (i32, i32) {
    %c0_i32 = arith.constant 0 : i32
    %c0_i32_0 = arith.constant 0 : i32
    return %c0_i32, %arg0 : i32, i32
  }
  func.func @transform_2(%arg0: i32, %arg1: i32, %arg2: memref<1xi32, #tpu.memory_space<smem>>) -> (i32, i32) {
    %c0_i32 = arith.constant 0 : i32
    %c0_i32_0 = arith.constant 0 : i32
    return %c0_i32, %arg0 : i32, i32
  }
  func.func @transform_3(%arg0: i32, %arg1: i32, %arg2: memref<1xi32, #tpu.memory_space<smem>>) -> (i32, i32) {
    %c0_i32 = arith.constant 0 : i32
    return %arg1, %arg0 : i32, i32
  }
}

</mosaic_0001>

<bundles_post_ra>
// kernel: tpu_custom_call.1
= control target key start
LH: loop header
LB: loop body
LE: loop exit
PB: predicated region body
PF: predicated region fallthrough
CT: control target
= control target key end

     0   :  { %10 = vsyncpa [#allocation5], 0  ;;  %s898_s0 = inlined_call_operand.<no memory space> [shape: s32[1], index: 0, kind: input, shape index: {}]   ;;  %s899_s1 = inlined_call_operand.hbm [shape: f32[16,32], index: 1, kind: input, shape index: {}]   ;;  %s900_s2 = inlined_call_operand.hbm [shape: f32[32,64], index: 2, kind: input, shape index: {}]   ;;  %s901_s3 = inlined_call_operand.vmem [shape: f32[1,64], index: 3, kind: input, shape index: {}]   ;;  %s902_s4 = inlined_call_operand.hbm [shape: f32[16,64], index: 4, kind: output, shape index: {}]  }
   0x1   :  { %12 = vsyncpa [#allocation5 + $0x1], 0 }
   0x2   :  { %13 = vsyncpa [#allocation8], 0 }
   0x3   :  { %14 = vsyncpa [#allocation6], 0 }
   0x4   :  { %16 = vsyncpa [#allocation6 + $0x1], 0  ;;  %s728_s15 = smov 0   ;;  %s730_s0 = smov 0  }
   0x5   :  { %s732_s16 = smov 0   ;;  %s734_s17 = smov 0  }
   0x6   :  { %s736_s18 = smov 0   ;;  %s738_s19 = smov 0  }
   0x7 LB: > { %s445_s20 = sadd.s32 4294967295, %s694_s19   ;;  %s446_s21 = sadd.s32 4294967294, %s694_s19   ;;  %s694_s19 = sphi %s738_s19, %s22_s19   ;;  %s690_s18 = sphi %s736_s18, %s920_s18   ;;  %s686_s17 = sphi %s734_s17, %s919_s17   ;;  %s682_s16 = sphi %s732_s16, %s918_s16   ;;  %s678_s0 = sphi %s730_s0, %s917_s0   ;;  %s674_s15 = sphi %s728_s15, %s916_s15  }
   0x8   : > { %p54_p0 = scmp.ne.s32.totalorder %s678_s0, %s674_s15  ;;  %p762_p1 = scmp.eq.s32.totalorder %s445_s20, 0 }
   0x9   : > { %p766_p2 = scmp.eq.s32.totalorder %s445_s20, 1  ;;  %p138_p3 = scmp.eq.s32.totalorder %s446_s21, 1 }
   0xa   : > { %p772_p4 = por %p762_p1, %p54_p0  ;;  %p447_p5 = scmp.ge.s32.totalorder %s694_s19, 1 }
   0xb   : > { %p777_p6 = por %p138_p3, %p54_p0  ;;  %p145_p7 = scmp.lt.s32.totalorder %s694_s19, 3 }
   0xc   : > { %s906_s24 = scalar_select %p772_p4, 1, 0 }
   0xd   : > { %s907_s25 = scalar_select %p777_p6, 1, 0 }
   0xe   : > { %p782_p8 = pnand %p447_p5, %p145_p7  ;;  %s696_s27 = smov [#allocation7]  }
   0xf   : > { %s159_s28 = sshll.u32 %s696_s27, 4  ;;  %s31_s30 = sadd.s32 1, %s690_s18  ;;  %s160_s28 = int_to_ptr.vmem [resolvable:$true] %s159_s28 }
  0x10   : > { %p487_p9 = pneg %p782_p8  ;;  %s567_s5 = scalar_lea.vmem %s160_s28, 512 }
  0x11   : > { %p568_p13 = scmp.ne.s32.totalorder %s160_s28, %s567_s5  ;;  %p575_p5 = scmp.lt.s32.totalorder %s160_s28, %s160_s28 }
  0x12   : > { %p791_p11 = pnand %p487_p9, %p762_p1  ;;  %p576_p7 = scmp.lt.s32.totalorder %s567_s5, %s567_s5 }
  0x14   : > { %p558_p12 = pneg %p791_p11  ;;  %p577_p6 = por %p576_p7, %p575_p5 }
  0x16   : > { %p570_p0 = pnand %p568_p13, %p558_p12 }
  0x18   : > { %p571_p3 = pneg %p570_p0 }
  0x1a   : > { %p578_p4 = pnand %p577_p6, %p571_p3 }
  0x1c   : > { %581 = shalt.err (!%p578_p4)
}
  0x1d   : > { %s697_s6 = smov 128   ;;  %s698_s7 = smov 8  }
  0x1e   : > { %490 = dma.hbm_to_vmem [thread:$0]  (!%p791_p11), %s900_s2, 512, %s160_s28, [#allocation8], %s697_s6, %s697_s6, %s698_s7  }
  0x1f   : > { %p32_p6 = scmp.ge.s32.totalorder %s31_s30, 2  ;;  %s41_s10 = sadd.s32 1, %s682_s16 }
  0x20   : > { %p48_p4 = scmp.ne.s32.totalorder %s682_s16, %s678_s0  ;;  %p49_p9 = scmp.eq.s32.totalorder %s694_s19, 0 }
  0x21   : > { %s922_s30 = smov (%p32_p6, %s31_s30), 0  ;;  %p500_p0 = scmp.lt.s32.totalorder %s694_s19, 2 }
  0x22   : > { %p809_p12 = por %p49_p9, %p48_p4  ;;  %p815_p13 = por %p766_p2, %p48_p4 }
  0x23   : > { %s38_s13 = ssub.s32 %s690_s18, %s922_s30  ;;  %s179_s14 = sand.u32 1, %s682_s16  }
  0x24   : > { %p39_p11 = scmp.eq.s32.totalorder %s38_s13, 0  ;;  %s451_s20 = sshll.u32 %s179_s14, 3 }
  0x25   : > { %s452_s27 = sshll.u32 %s690_s18, 7  ;;  %s183_s6 = scalar_lea.vmem [#allocation4], %s451_s20 }
  0x26   : > { %s824_s21 = scalar_select %p39_p11, %s682_s16, %s41_s10  }
  0x27   : > { %s188_s5 = scalar_lea.hbm %s899_s1, %s452_s27  ;;  %s190_s7 = sshll.u32 %s183_s6, 4  ;;  %s191_s7 = int_to_ptr.vmem [resolvable:$true] %s190_s7 }
  0x28   : > { %p832_p2 = pnand %p500_p0, %p809_p12  ;;  %s180_s8 = scalar_lea.sflag [#allocation5], %s179_s14 }
  0x29   : > { %s595_s9 = scalar_lea.vmem %s191_s7, 128  ;;  %s699_s10 = smov [#allocation4]  }
  0x2a   : > { %p584_p3 = pneg %p832_p2  ;;  %p596_p5 = scmp.ne.s32.totalorder %s191_s7, %s595_s9 }
  0x2b   : > { %s600_s13 = sshll.u32 %s699_s10, 4  ;;  %s601_s13 = int_to_ptr.vmem [resolvable:$false] %s600_s13 }
  0x2c   : > { %p598_p7 = pnand %p596_p5, %p584_p3  ;;  %s602_s27 = scalar_lea.vmem %s601_s13, 256 }
  0x2d   : > { %p603_p4 = scmp.lt.s32.totalorder %s191_s7, %s601_s13  ;;  %p604_p9 = scmp.lt.s32.totalorder %s602_s27, %s595_s9 }
  0x2e   : > { %p599_p6 = pneg %p598_p7 }
  0x2f   : > { %p605_p11 = por %p604_p9, %p603_p4 }
  0x31   : > { %p606_p10 = pnand %p605_p11, %p599_p6 }
  0x33   : > { %609 = shalt.err (!%p606_p10)
}
  0x34   : > { %494 = dma.hbm_to_vmem [thread:$0]  (!%p832_p2), %s188_s5, 128, %s191_s7, %s180_s8  }
  0x35   : > { %199 = sbr.rel (%p782_p8) target bundleno = 280 (0x118), region = 32  ;;  %s843_s11 = sand.u32 (!%p782_p8), 1, %s678_s0  }
  0x36   : > { %s454_s14 = sshll.u32 (!%p782_p8), %s843_s11, 3  ;;  %s202_s20 = scalar_lea.sflag (!%p782_p8), [#allocation5], %s843_s11 }
  0x37   : > { %s205_s28 = scalar_lea.vmem (!%p782_p8), [#allocation4], %s454_s14  ;;  %p913_p12 = scmp.ne.s32.totalorder (!%p782_p8), %s906_s24, 0 }
  0x3a   : > { %661 = dma.done.wait (%p913_p12), %s202_s20, 128  }
  0x3b   : > { %663 = vsyncadd (%p913_p12), %s202_s20, 4294967168 }
  0x3c   : > { %665 = dma.done.wait (%p762_p1), [#allocation8], 512  }
  0x3d   : > { %667 = vsyncadd (%p762_p1), [#allocation8], 4294966784  ;;  %v700_v0 = vmov 0.0   ;;  %vm701_vm0 = vmmov 0   ;;  %v242_v1 = vld [vmem:[#allocation7 + $0x18] sm:$0xff]  ;;  %v241_v2 = vld [vmem:[#allocation7 + $0x10] sm:$0xff] }
  0x3e   : > { %468 = vmatprep.subr.mxu0 %v700_v0  ;;  %476 = vmatprep.mubr.msk.f32.mxu0 %vm701_vm0, %v700_v0  ;;  %v240_v3 = vld [vmem:[#allocation7 + $0x8] sm:$0xff]  ;;  %v239_v4 = vld [vmem:[#allocation7] sm:$0xff]  ;;  %v238_v5 = vld [vmem:[%s205_s28] sm:$0xff]  ;;  %vm250_vm1 = vcmask 261120   ;;  %s460_s26 = sshll.u32 %s686_s17, 7  ;;  %s234_s29 = scalar_lea.vmem [#allocation9], %s454_s14 }
  0x3f   : > { %469 = vmatpush3.msra.mxu0 %v242_v1  ;;  %v457_v6 = vld [vmem:[%s901_s3] ss:$0 sm:$0xff]  ;;  %s342_s5 = sshll.u32 %s234_s29, 4  ;;  %vm325_vm2 = vcmask 523264   ;;  %s340_s23 = scalar_lea.hbm %s902_s4, %s460_s26  ;;  %s343_s5 = int_to_ptr.vmem [resolvable:$true] %s342_s5 }
  0x40   : > { %470 = vmatprep.subr.mxu0 %v700_v0  ;;  %s328_s8 = scalar_lea.sflag [#allocation6], %s843_s11  ;;  %s610_s9 = scalar_lea.vmem %s343_s5, 128 }
  0x41   : > { %471 = vmatpush3.msra.mxu0 %v241_v2  ;;  %p611_p1 = scmp.ne.s32.totalorder %s343_s5, %s610_s9  ;;  %s702_s10 = smov [#allocation9]  }
  0x42   : > { %472 = vmatprep.subr.mxu0 %v700_v0  ;;  %s614_s17 = sshll.u32 %s702_s10, 4  ;;  %s615_s17 = int_to_ptr.vmem [resolvable:$false] %s614_s17 }
  0x43   : > { %473 = vmatpush3.msra.mxu0 %v240_v3  ;;  %p612_p8 = pnand %p611_p1, %p815_p13  ;;  %s616_s13 = scalar_lea.vmem %s615_s17, 256 }
  0x44   : > { %474 = vmatprep.subr.mxu0 %v700_v0  ;;  %p617_p0 = scmp.lt.s32.totalorder %s343_s5, %s615_s17  ;;  %p618_p2 = scmp.lt.s32.totalorder %s616_s13, %s610_s9 }
  0x45   : > { %475 = vmatpush3.msra.mxu0 %v239_v4  ;;  %p613_p10 = pneg %p612_p8 }
  0x46   : > { %477 = vmatmul.mubr.msk.f32.vlgmr.msra.gmra.mxu0 %vm250_vm1, %v238_v5  ;;  %p619_p3 = por %p618_p2, %p617_p0 }
  0x48   : > { %p620_p5 = pnand %p619_p3, %p613_p10 }
 0x106   : > { %v320_v7 = vpop.f32.mrf.mxu0 }
 0x107   : > { %v321_v8 = vadd.f32 %v457_v6, %v320_v7 }
 0x108   : > { %v478_v9 = vpop.f32.mrf.mxu0 }
 0x109   : > { %v324_v10 = vmax.f32 %v321_v8, 0.0 }
 0x10b   : > { %326 = vst.msk [vmem:[%s234_s29] sm:$0xff] %vm325_vm2, %v324_v10 }
 0x10c   : > { %623 = shalt.err (!%p620_p5)
}
 0x10d   : > { %s624_s27 = scalar_lea.hbm %s340_s23, 128  ;;  %s628_s20 = scalar_lea.hbm %s902_s4, 256 }
 0x10e   : > { %p625_p7 = scmp.ne.s32.totalorder %s340_s23, %s624_s27  ;;  %p629_p9 = scmp.lt.s32.totalorder %s340_s23, %s902_s4 }
 0x10f   : > { %p630_p11 = scmp.lt.s32.totalorder %s628_s20, %s624_s27 }
 0x110   : > { %p626_p6 = pnand %p625_p7, %p815_p13 }
 0x111   : > { %p631_p12 = por %p630_p11, %p629_p9 }
 0x112   : > { %p627_p4 = pneg %p626_p6 }
 0x114   : > { %p632_p1 = pnand %p631_p12, %p627_p4 }
 0x116   : > { %635 = shalt.err (!%p632_p1)
}
 0x117   : > { %485 = dma.vmem_to_hbm [thread:$0]  (%p815_p13), %s343_s5, 128, %s340_s23, %s328_s8  }
 0x118 PF: > { %s354_s24 = sand.u32 1, %s674_s15   ;;  %p914_p8 = scmp.ne.s32.totalorder %s907_s25, 0 }
 0x119   : > { %p915_p10 = scmp.ge.s32.totalorder %s694_s19, 2  ;;  %s355_s26 = scalar_lea.sflag [#allocation6], %s354_s24 }
 0x11b   : > { %p496_p0 = pnand %p915_p10, %p914_p8 }
 0x11d   : > { %p497_p2 = pneg %p496_p0 }
 0x11f   : > { %669 = dma.done.wait (%p497_p2), %s355_s26, 128  }
 0x120   : > { %671 = vsyncadd (%p497_p2), %s355_s26, 4294967168  ;;  %s22_s19 = sadd.s32 1, %s694_s19   ;;  %s916_s15 = smov %s678_s0 }
 0x121   : > { %p19_p3 = scmp.ge.s32.totalorder %s22_s19, 4   ;;  %s917_s0 = smov %s682_s16 }
 0x122   : > { %s918_s16 = smov %s824_s21  ;;  %s919_s17 = smov %s690_s18 }
 0x123   : > { %s920_s18 = smov %s922_s30  ;;  %21 = sbr.rel (!%p19_p3) target bundleno = 7 (0x7), region = 85 }
 0x128   :  { %360 = vsyncpa [#allocation5], 1 }
 0x129   :  { %362 = vsyncpa [#allocation5 + $0x1], 1 }
 0x12a   :  { %363 = vsyncpa [#allocation8], 1 }
 0x12b   :  { %364 = vsyncpa [#allocation6], 1 }
 0x12c   :  { %366 = vsyncpa [#allocation6 + $0x1], 1 }

</bundles_post_ra>
